<compile_context>
chip_gen: v7x
topology: tpu7x:2x2x1
jax: 0.10.0
libtpu: 0.0.40
codegen_flags: <defaults>
</compile_context>

<pallas_src>
import math
import jax
import jax.numpy as jnp
from jax.experimental import pallas as pl
from jax.experimental.pallas import tpu as pltpu

_NEG_LARGE = -1e30  # padded-class logits lose max() and contribute exp(.)=0 to LSE


def _round_up(v, m):
    return ((v + m - 1) // m) * m


def logreg_kernel(x_ref, w_ref, b_ref, o_ref):
    # x_ref: (TN, Din) row tile; w_ref: (Din, Dp) resident; b_ref: (1, Dp) resident.
    x = x_ref[...]
    w = w_ref[...]
    cd = jnp.promote_types(x.dtype, w.dtype)  # bf16/bf16 -> bf16 MXU path; mixed -> f32
    logits = jnp.dot(x.astype(cd), w.astype(cd),
                     preferred_element_type=jnp.float32) + b_ref[...]  # (TN, Dp) f32
    m = jnp.max(logits, axis=-1, keepdims=True)
    z = logits - m
    lse = jnp.log(jnp.sum(jnp.exp(z), axis=-1, keepdims=True))
    o_ref[...] = (z - lse).astype(o_ref.dtype)  # lane-dense store


def prepare_params(weight, bias, *, lane_pad=128, param_dtype=jnp.bfloat16):
    """One-time prep (outside the hot path): transpose + lane-pad W, pad bias.

    weight: (Dout, Din) PyTorch layout, bias: (Dout,).
    Returns (w_t (Din, Dp) in param_dtype, bias (1, Dp) f32, Dout).
    """
    dout, din = weight.shape
    dout_p = max(lane_pad, _round_up(dout, lane_pad))
    w_t = (jnp.zeros((din, dout_p), param_dtype)
           .at[:, :dout].set(jnp.asarray(weight).astype(param_dtype).T))
    b2d = (jnp.full((1, dout_p), _NEG_LARGE, jnp.float32)
           .at[0, :dout].set(jnp.asarray(bias, jnp.float32)))
    return w_t, b2d, dout


def logreg_forward(x, w_t, b2d, dout, *,
                   target_tile_bytes=2 << 20,      # ~2 MiB HBM traffic per grid step
                   vmem_budget_bytes=48 << 20,     # safe on v7x (64 MiB physical VMEM)
                   trim_classes=True):
    """x: (N, Din) f32 or bf16.  w_t/b2d from prepare_params().  Returns (N, Dout)."""
    n, din = x.shape
    dout_p = w_t.shape[1]
    x_itemsize = jnp.dtype(x.dtype).itemsize
    w_itemsize = jnp.dtype(w_t.dtype).itemsize
    out_itemsize = 4  # f32 output

    per_row = din * x_itemsize + dout_p * out_itemsize          # streamed bytes / row
    resident = din * dout_p * w_itemsize + dout_p * 4            # W + bias in VMEM

    # --- row tile: big enough to amortize per-step overhead, small enough for VMEM ---
    tn = max(512, target_tile_bytes // per_row)
    avail = int(vmem_budget_bytes / 1.2) - resident               # 20% headroom
    if avail > 0:
        tn = min(tn, max(8, avail // (2 * per_row)))              # 2x for double-buffering
    if n >= 4 * 1024:                                             # enough work: keep >=4
        tn = min(tn, _round_up(-(-n // 4), 8))                    # grid steps for 2 TCs
    if tn >= n:
        tn = n                                                    # single full-extent block
    else:
        tn = max(8, (tn // 8) * 8)                                # multiple of 8 sublanes
    grid_n = -(-n // tn)                                          # cdiv; no row padding

    footprint = 2 * tn * per_row + resident
    vmem_limit = int(min(max(int(footprint * 1.2) + (2 << 20), 16 << 20), 100 << 20))

    cost = pl.CostEstimate(
        flops=2 * n * din * dout_p,
        transcendentals=n * (dout_p + 1),
        bytes_accessed=(n * din * x_itemsize + din * dout_p * w_itemsize
                        + dout_p * 4 + n * dout_p * out_itemsize),
    )

    out = pl.pallas_call(
        logreg_kernel,
        out_shape=jax.ShapeDtypeStruct((n, dout_p), jnp.float32),
        grid_spec=pl.GridSpec(
            grid=(grid_n,),
            in_specs=[
                pl.BlockSpec((tn, din), lambda i: (i, 0)),        # streamed row tile of x
                pl.BlockSpec((din, dout_p), lambda i: (0, 0)),    # W resident in VMEM
                pl.BlockSpec((1, dout_p), lambda i: (0, 0)),      # bias resident in VMEM
            ],
            out_specs=pl.BlockSpec((tn, dout_p), lambda i: (i, 0)),
        ),
        compiler_params=pltpu.CompilerParams(
            dimension_semantics=("parallel",),   # batch axis: shards across TCs on v7x
            vmem_limit_bytes=vmem_limit,
        ),
        cost_estimate=cost,
    )(x, w_t, b2d)

    if trim_classes and dout != dout_p:
        out = out[:, :dout]   # skip entirely when classes already lane-dense
    return out


def init_linear_params(key, in_channels, out_channels):
    # Mirrors nn.Linear.reset_parameters(): U(-1/sqrt(in), 1/sqrt(in)) for W and b.
    kw, kb = jax.random.split(key)
    bound = 1.0 / math.sqrt(in_channels)
    weight = jax.random.uniform(kw, (out_channels, in_channels),
                                minval=-bound, maxval=bound, dtype=jnp.float32)
    bias = jax.random.uniform(kb, (out_channels,),
                              minval=-bound, maxval=bound, dtype=jnp.float32)
    return weight, bias


if __name__ == "__main__":
    key = jax.random.PRNGKey(0)
    k_x, k_p = jax.random.split(key)

    batch, in_channels, out_channels = 8, 32, 16
    x = jax.random.normal(k_x, (batch, in_channels), dtype=jnp.float32)
    weight, bias = init_linear_params(k_p, in_channels, out_channels)

    # Snap demo inputs to bf16-representable values so the bf16-weight perf path
    # and the f32 XLA reference agree to f32 rounding (strong, tight check).
    x = x.astype(jnp.bfloat16).astype(jnp.float32)
    weight = weight.astype(jnp.bfloat16).astype(jnp.float32)

    ref = jax.nn.log_softmax(x @ weight.T + bias, axis=1)

    # Default perf path: bf16 resident weights, f32 activations / softmax math.
    w_bf, b2d, dout = prepare_params(weight, bias)  # param_dtype defaults to bf16
    out_bf = logreg_forward(x, w_bf, b2d, dout)
    jax.block_until_ready(out_bf)
    assert out_bf.shape == (batch, out_channels)
    assert jnp.allclose(out_bf, ref, atol=1e-4, rtol=1e-4), "bf16-W path mismatch"

    # f32-weight path (exercises generic dtype handling in the same kernel).
    w_f32, b2d32, _ = prepare_params(weight, bias, param_dtype=jnp.float32)
    out_f32 = logreg_forward(x, w_f32, b2d32, dout)
    jax.block_until_ready(out_f32)
    assert jnp.allclose(out_f32, ref, atol=1e-4, rtol=1e-4), "f32-W path mismatch"

    print("KERNEL_OK")
</pallas_src>

<mosaic_0001>
module attributes {stable_mosaic.version = 11 : i64} {
  func.func @logreg_kernel(%arg0: i32, %arg1: memref<8x32xf32, #tpu.memory_space<vmem>>, %arg2: memref<32x128xbf16, #tpu.memory_space<vmem>>, %arg3: memref<1x128xf32, #tpu.memory_space<vmem>>, %arg4: memref<8x128xf32, #tpu.memory_space<vmem>>) attributes {dimension_semantics = [#tpu.dimension_semantics<parallel>], iteration_bounds = array<i64: 1>, scalar_prefetch = 0 : i64, scratch_operands = 0 : i64, tpu.core_type = #tpu.core_type<tc>, window_params = [{transform_indices = @transform_0, window_bounds = array<i64: 8, 32>}, {pipeline_mode = #tpu.pipeline_mode<synchronous>, transform_indices = @transform_1, window_bounds = array<i64: 32, 128>}, {pipeline_mode = #tpu.pipeline_mode<synchronous>, transform_indices = @transform_2, window_bounds = array<i64: 1, 128>}, {transform_indices = @transform_3, window_bounds = array<i64: 8, 128>}]} {
    %c0 = arith.constant 0 : index
    %c0_0 = arith.constant 0 : index
    %0 = vector.load %arg1[%c0, %c0_0] : memref<8x32xf32, #tpu.memory_space<vmem>>, vector<8x32xf32>
    %c0_1 = arith.constant 0 : index
    %c0_2 = arith.constant 0 : index
    %1 = vector.load %arg2[%c0_1, %c0_2] : memref<32x128xbf16, #tpu.memory_space<vmem>>, vector<32x128xbf16>
    %2 = arith.extf %1 : vector<32x128xbf16> to vector<32x128xf32>
    %cst = arith.constant dense<0.000000e+00> : vector<8x128xf32>
    %3 = tpu.matmul %0, %2, %cst {dimension_numbers = #tpu.dot_dimension_numbers<[1], [0], [0], [1], [0, 0, 1, 1], [], []>} : vector<8x32xf32>, vector<32x128xf32>, vector<8x128xf32> -> vector<8x128xf32>
    %c0_3 = arith.constant 0 : index
    %c0_4 = arith.constant 0 : index
    %4 = vector.load %arg3[%c0_3, %c0_4] : memref<1x128xf32, #tpu.memory_space<vmem>>, vector<1x128xf32>
    %5 = vector.broadcast %4 : vector<1x128xf32> to vector<8x128xf32>
    %6 = arith.addf %3, %5 : vector<8x128xf32>
    %cst_5 = arith.constant dense<0xFF800000> : vector<8xf32>
    %7 = vector.multi_reduction <maximumf>, %6, %cst_5 [1] : vector<8x128xf32> to vector<8xf32>
    %8 = vector.shape_cast %7 : vector<8xf32> to vector<8x1xf32>
    %9 = vector.broadcast %8 : vector<8x1xf32> to vector<8x128xf32>
    %10 = arith.subf %6, %9 : vector<8x128xf32>
    %11 = math.exp %10 : vector<8x128xf32>
    %cst_6 = arith.constant dense<0.000000e+00> : vector<8xf32>
    %12 = vector.multi_reduction <add>, %11, %cst_6 [1] : vector<8x128xf32> to vector<8xf32>
    %13 = vector.shape_cast %12 : vector<8xf32> to vector<8x1xf32>
    %14 = math.log %13 : vector<8x1xf32>
    %15 = vector.broadcast %14 : vector<8x1xf32> to vector<8x128xf32>
    %16 = arith.subf %10, %15 : vector<8x128xf32>
    %c0_7 = arith.constant 0 : index
    %c0_8 = arith.constant 0 : index
    %17 = vector.load %arg4[%c0_7, %c0_8] : memref<8x128xf32, #tpu.memory_space<vmem>>, vector<8x128xf32>
    tpu.vector_store %arg4[%c0_7, %c0_8], %16 {strides = array<i32>} : memref<8x128xf32, #tpu.memory_space<vmem>>, vector<8x128xf32>,
    return
  }
  func.func @transform_0(%arg0: i32) -> (i32, i32) {
    %c0_i32 = arith.constant 0 : i32
    %c0_i32_0 = arith.constant 0 : i32
    return %arg0, %c0_i32 : i32, i32
  }
  func.func @transform_1(%arg0: i32) -> (i32, i32) {
    %c0_i32 = arith.constant 0 : i32
    %c0_i32_0 = arith.constant 0 : i32
    %c0_i32_1 = arith.constant 0 : i32
    return %c0_i32, %c0_i32_0 : i32, i32
  }
  func.func @transform_2(%arg0: i32) -> (i32, i32) {
    %c0_i32 = arith.constant 0 : i32
    %c0_i32_0 = arith.constant 0 : i32
    %c0_i32_1 = arith.constant 0 : i32
    return %c0_i32, %c0_i32_0 : i32, i32
  }
  func.func @transform_3(%arg0: i32) -> (i32, i32) {
    %c0_i32 = arith.constant 0 : i32
    %c0_i32_0 = arith.constant 0 : i32
    return %arg0, %c0_i32 : i32, i32
  }
}

</mosaic_0001>

<bundles_post_ra>
// kernel: tpu_custom_call.1
= control target key start
LH: loop header
LB: loop body
LE: loop exit
PB: predicated region body
PF: predicated region fallthrough
CT: control target
= control target key end

     0   :  { %8 = vsyncpa [#allocation3], 0  ;;  %s349_s0 = inlined_call_operand.hbm [shape: f32[8,32], index: 0, kind: input, shape index: {}]   ;;  %s350_s1 = inlined_call_operand.hbm [shape: bf16[32,128], index: 1, kind: input, shape index: {}]   ;;  %s351_s2 = inlined_call_operand.vmem [shape: f32[1,128], index: 2, kind: input, shape index: {}]   ;;  %s352_s3 = inlined_call_operand.hbm [shape: f32[8,128], index: 3, kind: output, shape index: {}]  }
   0x1   :  { %9 = vsyncpa [#allocation6], 0 }
   0x2   :  { %10 = vsyncpa [#allocation4], 0  ;;  %s275_s12 = smov [#allocation2]   ;;  %s276_s14 = smov [#allocation5]  }
   0x3   :  { %s17_s13 = sshll.u32 %s275_s12, 4  ;;  %s26_s15 = sshll.u32 %s276_s14, 4  ;;  %s18_s13 = int_to_ptr.vmem [resolvable:$true] %s17_s13  ;;  %s303_s15 = int_to_ptr.vmem [resolvable:$true] %s26_s15 }
   0x4   :  { %s203_s18 = scalar_lea.hbm %s349_s0, 128 }
   0x5   :  { %p204_p0 = scmp.ne.s32.totalorder %s349_s0, %s203_s18  ;;  %p207_p1 = scmp.lt.u32.totalorder %s203_s18, %s349_s0 }
   0x7   :  { %p209_p2 = pnand %p207_p1, %p204_p0 }
   0x9   :  { %212 = shalt.err (!%p209_p2)
}
   0xa   :  { %s213_s23 = scalar_lea.vmem %s18_s13, 128  ;;  %p218_p4 = scmp.lt.s32.totalorder %s18_s13, %s18_s13 }
   0xb   :  { %p214_p3 = scmp.ne.s32.totalorder %s18_s13, %s213_s23  ;;  %p219_p5 = scmp.lt.s32.totalorder %s213_s23, %s213_s23 }
   0xd   :  { %p220_p6 = por %p219_p5, %p218_p4 }
   0xf   :  { %p221_p7 = pnand %p220_p6, %p214_p3 }
  0x11   :  { %224 = shalt.err (!%p221_p7)
}
  0x12   :  { %20 = dma.hbm_to_vmem [thread:$0]  %s349_s0, 128, %s18_s13, [#allocation3]  }
  0x13   :  { %s225_s28 = scalar_lea.hbm %s350_s1, 256 }
  0x14   :  { %p226_p8 = scmp.ne.s32.totalorder %s350_s1, %s225_s28  ;;  %p229_p9 = scmp.lt.u32.totalorder %s225_s28, %s350_s1 }
  0x16   :  { %p231_p10 = pnand %p229_p9, %p226_p8 }
  0x18   :  { %234 = shalt.err (!%p231_p10)
}
  0x19   :  { %s235_s6 = scalar_lea.vmem %s303_s15, 256  ;;  %p240_p12 = scmp.lt.s32.totalorder %s303_s15, %s303_s15 }
  0x1a   :  { %p236_p11 = scmp.ne.s32.totalorder %s303_s15, %s235_s6  ;;  %p241_p13 = scmp.lt.s32.totalorder %s235_s6, %s235_s6 }
  0x1c   :  { %p242_p0 = por %p241_p13, %p240_p12 }
  0x1e   :  { %p243_p1 = pnand %p242_p0, %p236_p11 }
  0x20   :  { %246 = shalt.err (!%p243_p1)
}
  0x21   :  { %s277_s0 = smov 64   ;;  %s278_s7 = smov 4  }
  0x22   :  { %32 = dma.hbm_to_vmem [thread:$0]  %s350_s1, 256, %s303_s15, [#allocation6], %s277_s0, %s277_s0, %s278_s7  }
  0x23   :  { %269 = dma.done.wait [#allocation3], 128  }
  0x24   :  { %270 = vsyncadd [#allocation3], 4294967168 }
  0x25   :  { %271 = dma.done.wait [#allocation6], 256  }
  0x26   :  { %272 = vsyncadd [#allocation6], 4294967040  ;;  %v279_v0 = vmov 0.0|0.0   ;;  %vm280_vm0 = vmmov 0   ;;  %v281_v1 = vmov 0.0   ;;  %v161_v2 = vld [vmem:[#allocation5] sm:$0xff]  }
  0x27   :  { %185 = vmatprep.subr.bf16.mxu0 %v279_v0  ;;  %182 = vmatprep.mubr.msk.f32.mxu0 %vm280_vm0, %v281_v1  ;;  %v168_v3 = vld [vmem:[#allocation5 + $0x8] sm:$0xff]   ;;  %v41_v4 = vld [vmem:[#allocation2] sm:$0xff]  ;;  %vm57_vm1 = vcmask 261120   ;;  %s282_s1 = smov [#allocation7]  }
  0x28   :  { %187 = vmatpush3.bf16.msra.mxu0 %v161_v2  ;;  %v158_v5 = vld [vmem:[%s351_s2] ss:$0 sm:$0xff]  ;;  %s148_s12 = sshll.u32 %s282_s1, 4  ;;  %s149_s12 = int_to_ptr.vmem [resolvable:$true] %s148_s12 }
  0x29   :  { %188 = vmatprep.subr.bf16.mxu0 %v279_v0  ;;  %s247_s2 = scalar_lea.vmem %s149_s12, 128  ;;  %p252_p3 = scmp.lt.s32.totalorder %s149_s12, %s149_s12 }
  0x2a   :  { %p248_p2 = scmp.ne.s32.totalorder %s149_s12, %s247_s2  ;;  %p253_p4 = scmp.lt.s32.totalorder %s247_s2, %s247_s2 }
  0x2c   :  { %190 = vmatpush3.bf16.msra.mxu0 %v168_v3  ;;  %p254_p5 = por %p253_p4, %p252_p3 }
  0x2e   :  { %p255_p6 = pnand %p254_p5, %p248_p2 }
  0x2f   :  { %183 = vmatmul.mubr.msk.f32.vlgmr.msra.gmra.mrb[0].mxu0 %vm57_vm1, %v41_v4 }
 0x102   :  { %v127_v6 = vpop.f32.mrb[0].mxu0 }
 0x103   :  { %v128_v7 = vadd.f32 %v158_v5, %v127_v6  ;;  %v184_v8 = vpop.f32.mrb[1].mxu0 }
 0x105   :  { %131 = vmax.xlane.f32.xlu0 %v128_v7 }
 0x192   :  { %v132_v9 = vpop.xlane.xlu0 %131 }
 0x193   :  { %v133_v10 = vsub.f32 %v128_v7, %v132_v9 }
 0x195   :  { %v134_v11 = vmul.f32 1.442695, %v133_v10 }
 0x197   :  { %199 = vpow2.f32 %v134_v11 }
 0x1a1   :  { %v200_v12 = vpop.eup %199 }
 0x1a2   :  { %136 = vadd.xlane.f32.xlu0 %v200_v12 }
 0x22f   :  { %v137_v13 = vpop.xlane.xlu0 %136 }
 0x230   :  { %201 = vlog2.f32 %v137_v13 }
 0x23a   :  { %v202_v14 = vpop.eup %201 }
 0x23b   :  { %v139_v15 = vmul.f32 0.6931472, %v202_v14 }
 0x23d   :  { %v140_v16 = vsub.f32 %v133_v10, %v139_v15 }
 0x23f   :  { %141 = vst [vmem:[#allocation7] sm:$0xff] %v140_v16 }
 0x240   :  { %258 = shalt.err (!%p255_p6)
}
 0x241   :  { %s259_s15 = scalar_lea.hbm %s352_s3, 128 }
 0x242   :  { %p260_p7 = scmp.ne.s32.totalorder %s352_s3, %s259_s15  ;;  %p263_p8 = scmp.lt.u32.totalorder %s259_s15, %s352_s3 }
 0x244   :  { %p265_p9 = pnand %p263_p8, %p260_p7 }
 0x246   :  { %268 = shalt.err (!%p265_p9)
}
 0x247   :  { %151 = dma.vmem_to_hbm [thread:$0]  %s149_s12, 128, %s352_s3, [#allocation4]  }
 0x248   :  { %273 = dma.done.wait [#allocation4], 128  }
 0x249   :  { %274 = vsyncadd [#allocation4], 4294967168 }
 0x24a   :  { %155 = vsyncpa [#allocation3], 1 }
 0x24b   :  { %156 = vsyncpa [#allocation6], 1 }
 0x24c   :  { %157 = vsyncpa [#allocation4], 1 }

</bundles_post_ra>
